<compile_context>
chip_gen: v5e
topology: v5e:2x2
jax: 0.10.0
libtpu: 0.0.40
codegen_flags: <defaults>
</compile_context>

<pallas_src>
import functools

import jax
import jax.numpy as jnp
from jax import lax
from jax.experimental import pallas as pl
from jax.experimental.pallas import tpu as pltpu


def _round_up(x, m):
    return (x + m - 1) // m * m


def _r8(x):
    return _round_up(max(int(x), 1), 8)


def _r128(x):
    return _round_up(max(int(x), 1), 128)


def _vmem_capacity_bytes():
    try:
        return int(pltpu.get_tpu_info().vmem_capacity_bytes)
    except Exception:
        return 64 * 1024 * 1024  # conservative (v7x per-TC VMEM)


def _pick_tb(B, per_img_bytes, budget_bytes):
    """Images per grid step: fit the VMEM budget, prefer >=4 grid steps so a
    megacore part gets >=2 pipelined steps per TensorCore, else >=2 steps."""
    cap = max(1, budget_bytes // max(per_img_bytes, 1))
    divs = [d for d in range(1, B + 1) if B % d == 0 and d <= cap]
    if not divs:
        return 1
    for min_steps in (4, 2, 1):
        pref = [d for d in divs if B // d >= min_steps]
        if pref:
            return max(pref)
    return max(divs)


def _pick_strip(H_out, WL, KH, vreg_budget_bytes=128 * 1024):
    """Output rows per inner strip: keep rows-window + rolled + acc under a
    fraction of the 256 KiB vreg file.  Must divide H_out (no ragged tail)."""
    max_rows = (vreg_budget_bytes // 4) // max(WL, 1)
    cap = max(1, (max_rows - 2 * (KH - 1)) // 3)
    cap = min(cap, H_out)
    return max(d for d in range(1, H_out + 1) if H_out % d == 0 and d <= cap)


def _pick_copy_chunk(H, WL):
    """Input rows copied into the padded scratch per chunk (bounds vregs)."""
    cap = max(8, (16384 // max(WL, 1)) // 8 * 8)
    return min(H, cap)


def _conv_mask_kernel(w_ref, x_ref, o_ref, xp_ref, *, KH, KW, pad, H, W,
                      H_out, W_out, STRIP, CPY):
    # w_ref : (KH*KW,)            f32 SMEM  - flat scalar taps
    # x_ref : (TB, H, W)          f32 VMEM  - unpadded input block
    # o_ref : (TB, H_out, W_out)  f32 VMEM  - exact-width output block
    # xp_ref: (TB, Hp, WL)        f32 VMEM scratch - zero-padded image,
    #                             WL % 128 == 0, image stored at lanes [0, W)
    TB = x_ref.shape[0]
    Hp, WL = xp_ref.shape[1], xp_ref.shape[2]
    WIN = STRIP + KH - 1
    n_strips = H_out // STRIP
    n_cpy = -(-H // CPY)

    # Hoist the tap scalars: one SMEM read each, reused for every image/strip.
    w = [w_ref[i] for i in range(KH * KW)]

    def img_body(b, carry):
        # ---- Build the zero-padded image in the VMEM scratch -------------
        if pad > 0:
            xp_ref[b, 0:pad, :] = jnp.zeros((pad, WL), jnp.float32)
            xp_ref[b, pad + H:Hp, :] = jnp.zeros((pad, WL), jnp.float32)

        def copy_body(ci, c):
            # Last chunk may overlap the previous one (rows rewritten with
            # identical data) so any H works without a ragged tail.
            r = jnp.minimum(ci * CPY, H - CPY)
            src = x_ref[b, pl.ds(r, CPY), :]
            xp_ref[b, pl.ds(pad + r, CPY), 0:W] = src
            if WL > W:
                xp_ref[b, pl.ds(pad + r, CPY), W:WL] = jnp.zeros(
                    (CPY, WL - W), jnp.float32)
            return c

        lax.fori_loop(0, n_cpy, copy_body, 0)

        # ---- dx-outer convolution over output-row strips ------------------
        def strip_body(si, c):
            r0 = si * STRIP
            if STRIP % 8 == 0:
                r0 = pl.multiple_of(r0, 8)
            rows = xp_ref[b, pl.ds(r0, WIN), :]          # one window load
            acc = jnp.zeros((STRIP, WL), jnp.float32)
            for dx in range(KW):                          # <= KW-1 lane rolls
                # Desired: shifted[:, j] = xsc[:, j + dx - pad].  Wrapped
                # lanes read only the zeroed band [W, WL) (see wrapper
                # assert), which reproduces the left/right zero padding.
                shift = (pad - dx) % WL
                rolled = rows if shift == 0 else pltpu.roll(rows, shift, 1)
                for dy in range(KH):
                    acc = acc + w[dy * KW + dx] * rolled[dy:dy + STRIP, :]
            o_ref[b, pl.ds(r0, STRIP), :] = acc[:, :W_out]
            return c

        lax.fori_loop(0, n_strips, strip_body, 0)
        return carry

    lax.fori_loop(0, TB, img_body, 0)


def conv_with_mask(x_nchw, mask_2d):
    """Equivalent of F.conv2d(x, mask[None, None], padding=mask.shape[0] // 2).

    x_nchw : (B, 1, H, W) float32
    mask_2d: (KH, KW) float32
    returns: (B, 1, H_out, W_out) float32
    """
    B, C, H, W = x_nchw.shape
    if C != 1:
        raise ValueError("ConvWithMask uses a (1,1,KH,KW) weight (1 channel).")
    KH, KW = mask_2d.shape
    # padding = KH // 2 on BOTH dims, matching the PyTorch module
    # (self.mask.shape[2] // 2), intentionally even for non-square masks.
    pad = KH // 2
    H_out = H + 2 * pad - KH + 1
    W_out = W + 2 * pad - KW + 1
    if H_out <= 0 or W_out <= 0:
        raise ValueError(
            f"Degenerate output shape ({H_out},{W_out}) for input ({H},{W}) "
            f"and mask ({KH},{KW}) with padding {pad}.")
    Hp = H + 2 * pad

    # Lane-dense scratch width.  Roll-wrap safety: wrapped lanes must only
    # ever read the zeroed band [W, WL), which requires WL >= W + pad; the
    # 128-multiple of W + 2*pad guarantees it.
    WL = _round_up(W + 2 * pad, 128)
    assert WL >= W + 2 * pad and WL % 128 == 0

    x = x_nchw[:, 0, :, :].astype(jnp.float32)
    w_flat = mask_2d.astype(jnp.float32).reshape(-1)

    # Generation-aware VMEM budgets (128 MiB on v5e/v6e, 64 MiB on v7x).
    vmem_cap = _vmem_capacity_bytes()
    if vmem_cap >= 128 * 1024 * 1024:
        budget_bytes, vmem_limit = 28 * 1024 * 1024, 64 * 1024 * 1024
    else:
        budget_bytes, vmem_limit = 16 * 1024 * 1024, 48 * 1024 * 1024

    # Per-image VMEM: double-buffered in/out blocks + single padded scratch,
    # accounted at (8,128)-tiled layout sizes.
    per_img = 4 * (2 * _r8(H) * _r128(W)
                   + 2 * _r8(H_out) * _r128(W_out)
                   + _r8(Hp) * WL)
    TB = _pick_tb(B, per_img, budget_bytes)
    grid = (B // TB,)

    STRIP = _pick_strip(H_out, WL, KH)
    CPY = _pick_copy_chunk(H, WL)

    kernel = functools.partial(
        _conv_mask_kernel, KH=KH, KW=KW, pad=pad, H=H, W=W,
        H_out=H_out, W_out=W_out, STRIP=STRIP, CPY=CPY)

    out = pl.pallas_call(
        kernel,
        out_shape=jax.ShapeDtypeStruct((B, H_out, W_out), jnp.float32),
        grid_spec=pltpu.PrefetchScalarGridSpec(
            num_scalar_prefetch=0,
            grid=grid,
            in_specs=[
                # Flat tap table in SMEM (1-D avoids (8,128) SMEM padding).
                pl.BlockSpec(memory_space=pltpu.MemorySpace.SMEM),
                # Unpadded input: block = full (H, W) spatial extent.
                pl.BlockSpec((TB, H, W), lambda i: (i, 0, 0)),
            ],
            out_specs=pl.BlockSpec((TB, H_out, W_out), lambda i: (i, 0, 0)),
            scratch_shapes=[pltpu.VMEM((TB, Hp, WL), jnp.float32)],
        ),
        compiler_params=pltpu.CompilerParams(
            dimension_semantics=("parallel",),
            vmem_limit_bytes=vmem_limit,
        ),
    )(w_flat, x)

    # Restore NCHW (C=1); no width slice needed (output is exact W_out wide).
    return out[:, None, :, :]


def _reference(x_nchw, mask_2d):
    pad = mask_2d.shape[0] // 2
    w = mask_2d[None, None, :, :].astype(jnp.float32)
    return lax.conv_general_dilated(
        x_nchw.astype(jnp.float32),
        w,
        window_strides=(1, 1),
        padding=((pad, pad), (pad, pad)),
        dimension_numbers=("NCHW", "OIHW", "NCHW"),
    )


if __name__ == "__main__":
    key = jax.random.PRNGKey(0)
    k_x, k_m = jax.random.split(key)

    B, C, H, W = 2, 1, 16, 16
    KH, KW = 5, 5

    x = jax.random.normal(k_x, (B, C, H, W), dtype=jnp.float32)
    mask = jax.random.normal(k_m, (KH, KW), dtype=jnp.float32)

    conv_fn = jax.jit(conv_with_mask)
    out = jax.block_until_ready(conv_fn(x, mask))

    ref = _reference(x, mask)
    assert out.shape == ref.shape, (out.shape, ref.shape)
    assert jnp.allclose(out, ref, atol=1e-4, rtol=1e-4), "mismatch vs reference"

    print("KERNEL_OK")
</pallas_src>

<mosaic_0001>
module attributes {stable_mosaic.version = 11 : i64} {
  func.func @_conv_mask_kernel(%arg0: i32, %arg1: memref<25xf32, #tpu.memory_space<smem>>, %arg2: memref<1x16x16xf32, #tpu.memory_space<vmem>>, %arg3: memref<1x16x16xf32, #tpu.memory_space<vmem>>, %arg4: memref<1x20x128xf32, #tpu.memory_space<vmem>>) attributes {dimension_semantics = [#tpu.dimension_semantics<parallel>], iteration_bounds = array<i64: 2>, scalar_prefetch = 0 : i64, scratch_operands = 1 : i64, tpu.core_type = #tpu.core_type<tc>, window_params = [{transform_indices = @transform_0, window_bounds = array<i64: 25>}, {transform_indices = @transform_1, window_bounds = array<i64: 1, 16, 16>}, {transform_indices = @transform_2, window_bounds = array<i64: 1, 16, 16>}]} {
    %c0 = arith.constant 0 : index
    %0 = memref.load %arg1[%c0] : memref<25xf32, #tpu.memory_space<smem>>
    %c1 = arith.constant 1 : index
    %1 = memref.load %arg1[%c1] : memref<25xf32, #tpu.memory_space<smem>>
    %c2 = arith.constant 2 : index
    %2 = memref.load %arg1[%c2] : memref<25xf32, #tpu.memory_space<smem>>
    %c3 = arith.constant 3 : index
    %3 = memref.load %arg1[%c3] : memref<25xf32, #tpu.memory_space<smem>>
    %c4 = arith.constant 4 : index
    %4 = memref.load %arg1[%c4] : memref<25xf32, #tpu.memory_space<smem>>
    %c5 = arith.constant 5 : index
    %5 = memref.load %arg1[%c5] : memref<25xf32, #tpu.memory_space<smem>>
    %c6 = arith.constant 6 : index
    %6 = memref.load %arg1[%c6] : memref<25xf32, #tpu.memory_space<smem>>
    %c7 = arith.constant 7 : index
    %7 = memref.load %arg1[%c7] : memref<25xf32, #tpu.memory_space<smem>>
    %c8 = arith.constant 8 : index
    %8 = memref.load %arg1[%c8] : memref<25xf32, #tpu.memory_space<smem>>
    %c9 = arith.constant 9 : index
    %9 = memref.load %arg1[%c9] : memref<25xf32, #tpu.memory_space<smem>>
    %c10 = arith.constant 10 : index
    %10 = memref.load %arg1[%c10] : memref<25xf32, #tpu.memory_space<smem>>
    %c11 = arith.constant 11 : index
    %11 = memref.load %arg1[%c11] : memref<25xf32, #tpu.memory_space<smem>>
    %c12 = arith.constant 12 : index
    %12 = memref.load %arg1[%c12] : memref<25xf32, #tpu.memory_space<smem>>
    %c13 = arith.constant 13 : index
    %13 = memref.load %arg1[%c13] : memref<25xf32, #tpu.memory_space<smem>>
    %c14 = arith.constant 14 : index
    %14 = memref.load %arg1[%c14] : memref<25xf32, #tpu.memory_space<smem>>
    %c15 = arith.constant 15 : index
    %15 = memref.load %arg1[%c15] : memref<25xf32, #tpu.memory_space<smem>>
    %c16 = arith.constant 16 : index
    %16 = memref.load %arg1[%c16] : memref<25xf32, #tpu.memory_space<smem>>
    %c17 = arith.constant 17 : index
    %17 = memref.load %arg1[%c17] : memref<25xf32, #tpu.memory_space<smem>>
    %c18 = arith.constant 18 : index
    %18 = memref.load %arg1[%c18] : memref<25xf32, #tpu.memory_space<smem>>
    %c19 = arith.constant 19 : index
    %19 = memref.load %arg1[%c19] : memref<25xf32, #tpu.memory_space<smem>>
    %c20 = arith.constant 20 : index
    %20 = memref.load %arg1[%c20] : memref<25xf32, #tpu.memory_space<smem>>
    %c21 = arith.constant 21 : index
    %21 = memref.load %arg1[%c21] : memref<25xf32, #tpu.memory_space<smem>>
    %c22 = arith.constant 22 : index
    %22 = memref.load %arg1[%c22] : memref<25xf32, #tpu.memory_space<smem>>
    %c23 = arith.constant 23 : index
    %23 = memref.load %arg1[%c23] : memref<25xf32, #tpu.memory_space<smem>>
    %c24 = arith.constant 24 : index
    %24 = memref.load %arg1[%c24] : memref<25xf32, #tpu.memory_space<smem>>
    %c0_i32 = arith.constant 0 : i32
    %cst = arith.constant 0.000000e+00 : f32
    %25 = vector.broadcast %cst : f32 to vector<2x128xf32>
    %26 = arith.index_cast %c0_i32 : i32 to index
    %c0_0 = arith.constant 0 : index
    %c0_1 = arith.constant 0 : index
    %27 = vector.load %arg4[%26, %c0_0, %c0_1] : memref<1x20x128xf32, #tpu.memory_space<vmem>>, vector<1x2x128xf32>
    %28 = vector.shape_cast %27 : vector<1x2x128xf32> to vector<2x128xf32>
    %29 = vector.shape_cast %25 : vector<2x128xf32> to vector<1x2x128xf32>
    tpu.vector_store %arg4[%26, %c0_0, %c0_1], %29 {strides = array<i32>} : memref<1x20x128xf32, #tpu.memory_space<vmem>>, vector<1x2x128xf32>,
    %cst_2 = arith.constant 0.000000e+00 : f32
    %30 = vector.broadcast %cst_2 : f32 to vector<2x128xf32>
    %31 = arith.index_cast %c0_i32 : i32 to index
    %c18_3 = arith.constant 18 : index
    %c0_4 = arith.constant 0 : index
    %32 = vector.load %arg4[%31, %c18_3, %c0_4] : memref<1x20x128xf32, #tpu.memory_space<vmem>>, vector<1x2x128xf32>
    %33 = vector.shape_cast %32 : vector<1x2x128xf32> to vector<2x128xf32>
    %34 = vector.shape_cast %30 : vector<2x128xf32> to vector<1x2x128xf32>
    tpu.vector_store %arg4[%31, %c18_3, %c0_4], %34 {strides = array<i32>} : memref<1x20x128xf32, #tpu.memory_space<vmem>>, vector<1x2x128xf32>,
    %c0_i32_5 = arith.constant 0 : i32
    %c16_i32 = arith.constant 16 : i32
    %35 = arith.muli %c0_i32_5, %c16_i32 : i32
    %c0_i32_6 = arith.constant 0 : i32
    %36 = arith.minsi %35, %c0_i32_6 : i32
    %37 = arith.index_cast %c0_i32 : i32 to index
    %38 = arith.index_cast %36 : i32 to index
    %c0_7 = arith.constant 0 : index
    %39 = vector.load %arg2[%37, %38, %c0_7] : memref<1x16x16xf32, #tpu.memory_space<vmem>>, vector<1x16x16xf32>
    %40 = vector.shape_cast %39 : vector<1x16x16xf32> to vector<16x16xf32>
    %c2_i32 = arith.constant 2 : i32
    %41 = arith.addi %c2_i32, %36 : i32
    %42 = arith.index_cast %c0_i32 : i32 to index
    %43 = arith.index_cast %41 : i32 to index
    %c0_8 = arith.constant 0 : index
    %44 = vector.load %arg4[%42, %43, %c0_8] : memref<1x20x128xf32, #tpu.memory_space<vmem>>, vector<1x16x16xf32>
    %45 = vector.shape_cast %44 : vector<1x16x16xf32> to vector<16x16xf32>
    %46 = vector.shape_cast %40 : vector<16x16xf32> to vector<1x16x16xf32>
    tpu.vector_store %arg4[%42, %43, %c0_8], %46 {strides = array<i32>} : memref<1x20x128xf32, #tpu.memory_space<vmem>>, vector<1x16x16xf32>,
    %cst_9 = arith.constant 0.000000e+00 : f32
    %47 = vector.broadcast %cst_9 : f32 to vector<16x112xf32>
    %c2_i32_10 = arith.constant 2 : i32
    %48 = arith.addi %c2_i32_10, %36 : i32
    %49 = arith.index_cast %c0_i32 : i32 to index
    %50 = arith.index_cast %48 : i32 to index
    %c16_11 = arith.constant 16 : index
    %51 = vector.load %arg4[%49, %50, %c16_11] : memref<1x20x128xf32, #tpu.memory_space<vmem>>, vector<1x16x112xf32>
    %52 = vector.shape_cast %51 : vector<1x16x112xf32> to vector<16x112xf32>
    %53 = vector.shape_cast %47 : vector<16x112xf32> to vector<1x16x112xf32>
    tpu.vector_store %arg4[%49, %50, %c16_11], %53 {strides = array<i32>} : memref<1x20x128xf32, #tpu.memory_space<vmem>>, vector<1x16x112xf32>,
    %c1_i32 = arith.constant 1 : i32
    %c0_i32_12 = arith.constant 0 : i32
    %c16_i32_13 = arith.constant 16 : i32
    %54 = arith.muli %c0_i32_12, %c16_i32_13 : i32
    %55 = tpu.assume_multiple %54, 8 : i32
    %56 = arith.index_cast %c0_i32 : i32 to index
    %57 = arith.index_cast %55 : i32 to index
    %c0_14 = arith.constant 0 : index
    %58 = vector.load %arg4[%56, %57, %c0_14] : memref<1x20x128xf32, #tpu.memory_space<vmem>>, vector<1x20x128xf32>
    %59 = vector.shape_cast %58 : vector<1x20x128xf32> to vector<20x128xf32>
    %cst_15 = arith.constant 0.000000e+00 : f32
    %60 = vector.broadcast %cst_15 : f32 to vector<16x128xf32>
    %c2_i32_16 = arith.constant 2 : i32
    %61 = tpu.dynamic_rotate %59 by %c2_i32_16 dim 1 : vector<20x128xf32>, i32 -> vector<20x128xf32>
    %62 = vector.extract_strided_slice %61 {offsets = [0, 0], sizes = [16, 128], strides = [1, 1]} : vector<20x128xf32> to vector<16x128xf32>
    %63 = vector.broadcast %0 : f32 to vector<16x128xf32>
    %64 = arith.mulf %63, %62 : vector<16x128xf32>
    %65 = arith.addf %60, %64 : vector<16x128xf32>
    %66 = vector.extract_strided_slice %61 {offsets = [1, 0], sizes = [16, 128], strides = [1, 1]} : vector<20x128xf32> to vector<16x128xf32>
    %67 = vector.broadcast %5 : f32 to vector<16x128xf32>
    %68 = arith.mulf %67, %66 : vector<16x128xf32>
    %69 = arith.addf %65, %68 : vector<16x128xf32>
    %70 = vector.extract_strided_slice %61 {offsets = [2, 0], sizes = [16, 128], strides = [1, 1]} : vector<20x128xf32> to vector<16x128xf32>
    %71 = vector.broadcast %10 : f32 to vector<16x128xf32>
    %72 = arith.mulf %71, %70 : vector<16x128xf32>
    %73 = arith.addf %69, %72 : vector<16x128xf32>
    %74 = vector.extract_strided_slice %61 {offsets = [3, 0], sizes = [16, 128], strides = [1, 1]} : vector<20x128xf32> to vector<16x128xf32>
    %75 = vector.broadcast %15 : f32 to vector<16x128xf32>
    %76 = arith.mulf %75, %74 : vector<16x128xf32>
    %77 = arith.addf %73, %76 : vector<16x128xf32>
    %78 = vector.extract_strided_slice %61 {offsets = [4, 0], sizes = [16, 128], strides = [1, 1]} : vector<20x128xf32> to vector<16x128xf32>
    %79 = vector.broadcast %20 : f32 to vector<16x128xf32>
    %80 = arith.mulf %79, %78 : vector<16x128xf32>
    %81 = arith.addf %77, %80 : vector<16x128xf32>
    %c1_i32_17 = arith.constant 1 : i32
    %82 = tpu.dynamic_rotate %59 by %c1_i32_17 dim 1 : vector<20x128xf32>, i32 -> vector<20x128xf32>
    %83 = vector.extract_strided_slice %82 {offsets = [0, 0], sizes = [16, 128], strides = [1, 1]} : vector<20x128xf32> to vector<16x128xf32>
    %84 = vector.broadcast %1 : f32 to vector<16x128xf32>
    %85 = arith.mulf %84, %83 : vector<16x128xf32>
    %86 = arith.addf %81, %85 : vector<16x128xf32>
    %87 = vector.extract_strided_slice %82 {offsets = [1, 0], sizes = [16, 128], strides = [1, 1]} : vector<20x128xf32> to vector<16x128xf32>
    %88 = vector.broadcast %6 : f32 to vector<16x128xf32>
    %89 = arith.mulf %88, %87 : vector<16x128xf32>
    %90 = arith.addf %86, %89 : vector<16x128xf32>
    %91 = vector.extract_strided_slice %82 {offsets = [2, 0], sizes = [16, 128], strides = [1, 1]} : vector<20x128xf32> to vector<16x128xf32>
    %92 = vector.broadcast %11 : f32 to vector<16x128xf32>
    %93 = arith.mulf %92, %91 : vector<16x128xf32>
    %94 = arith.addf %90, %93 : vector<16x128xf32>
    %95 = vector.extract_strided_slice %82 {offsets = [3, 0], sizes = [16, 128], strides = [1, 1]} : vector<20x128xf32> to vector<16x128xf32>
    %96 = vector.broadcast %16 : f32 to vector<16x128xf32>
    %97 = arith.mulf %96, %95 : vector<16x128xf32>
    %98 = arith.addf %94, %97 : vector<16x128xf32>
    %99 = vector.extract_strided_slice %82 {offsets = [4, 0], sizes = [16, 128], strides = [1, 1]} : vector<20x128xf32> to vector<16x128xf32>
    %100 = vector.broadcast %21 : f32 to vector<16x128xf32>
    %101 = arith.mulf %100, %99 : vector<16x128xf32>
    %102 = arith.addf %98, %101 : vector<16x128xf32>
    %103 = vector.extract_strided_slice %59 {offsets = [0, 0], sizes = [16, 128], strides = [1, 1]} : vector<20x128xf32> to vector<16x128xf32>
    %104 = vector.broadcast %2 : f32 to vector<16x128xf32>
    %105 = arith.mulf %104, %103 : vector<16x128xf32>
    %106 = arith.addf %102, %105 : vector<16x128xf32>
    %107 = vector.extract_strided_slice %59 {offsets = [1, 0], sizes = [16, 128], strides = [1, 1]} : vector<20x128xf32> to vector<16x128xf32>
    %108 = vector.broadcast %7 : f32 to vector<16x128xf32>
    %109 = arith.mulf %108, %107 : vector<16x128xf32>
    %110 = arith.addf %106, %109 : vector<16x128xf32>
    %111 = vector.extract_strided_slice %59 {offsets = [2, 0], sizes = [16, 128], strides = [1, 1]} : vector<20x128xf32> to vector<16x128xf32>
    %112 = vector.broadcast %12 : f32 to vector<16x128xf32>
    %113 = arith.mulf %112, %111 : vector<16x128xf32>
    %114 = arith.addf %110, %113 : vector<16x128xf32>
    %115 = vector.extract_strided_slice %59 {offsets = [3, 0], sizes = [16, 128], strides = [1, 1]} : vector<20x128xf32> to vector<16x128xf32>
    %116 = vector.broadcast %17 : f32 to vector<16x128xf32>
    %117 = arith.mulf %116, %115 : vector<16x128xf32>
    %118 = arith.addf %114, %117 : vector<16x128xf32>
    %119 = vector.extract_strided_slice %59 {offsets = [4, 0], sizes = [16, 128], strides = [1, 1]} : vector<20x128xf32> to vector<16x128xf32>
    %120 = vector.broadcast %22 : f32 to vector<16x128xf32>
    %121 = arith.mulf %120, %119 : vector<16x128xf32>
    %122 = arith.addf %118, %121 : vector<16x128xf32>
    %c127_i32 = arith.constant 127 : i32
    %123 = tpu.dynamic_rotate %59 by %c127_i32 dim 1 : vector<20x128xf32>, i32 -> vector<20x128xf32>
    %124 = vector.extract_strided_slice %123 {offsets = [0, 0], sizes = [16, 128], strides = [1, 1]} : vector<20x128xf32> to vector<16x128xf32>
    %125 = vector.broadcast %3 : f32 to vector<16x128xf32>
    %126 = arith.mulf %125, %124 : vector<16x128xf32>
    %127 = arith.addf %122, %126 : vector<16x128xf32>
    %128 = vector.extract_strided_slice %123 {offsets = [1, 0], sizes = [16, 128], strides = [1, 1]} : vector<20x128xf32> to vector<16x128xf32>
    %129 = vector.broadcast %8 : f32 to vector<16x128xf32>
    %130 = arith.mulf %129, %128 : vector<16x128xf32>
    %131 = arith.addf %127, %130 : vector<16x128xf32>
    %132 = vector.extract_strided_slice %123 {offsets = [2, 0], sizes = [16, 128], strides = [1, 1]} : vector<20x128xf32> to vector<16x128xf32>
    %133 = vector.broadcast %13 : f32 to vector<16x128xf32>
    %134 = arith.mulf %133, %132 : vector<16x128xf32>
    %135 = arith.addf %131, %134 : vector<16x128xf32>
    %136 = vector.extract_strided_slice %123 {offsets = [3, 0], sizes = [16, 128], strides = [1, 1]} : vector<20x128xf32> to vector<16x128xf32>
    %137 = vector.broadcast %18 : f32 to vector<16x128xf32>
    %138 = arith.mulf %137, %136 : vector<16x128xf32>
    %139 = arith.addf %135, %138 : vector<16x128xf32>
    %140 = vector.extract_strided_slice %123 {offsets = [4, 0], sizes = [16, 128], strides = [1, 1]} : vector<20x128xf32> to vector<16x128xf32>
    %141 = vector.broadcast %23 : f32 to vector<16x128xf32>
    %142 = arith.mulf %141, %140 : vector<16x128xf32>
    %143 = arith.addf %139, %142 : vector<16x128xf32>
    %c126_i32 = arith.constant 126 : i32
    %144 = tpu.dynamic_rotate %59 by %c126_i32 dim 1 : vector<20x128xf32>, i32 -> vector<20x128xf32>
    %145 = vector.extract_strided_slice %144 {offsets = [0, 0], sizes = [16, 128], strides = [1, 1]} : vector<20x128xf32> to vector<16x128xf32>
    %146 = vector.broadcast %4 : f32 to vector<16x128xf32>
    %147 = arith.mulf %146, %145 : vector<16x128xf32>
    %148 = arith.addf %143, %147 : vector<16x128xf32>
    %149 = vector.extract_strided_slice %144 {offsets = [1, 0], sizes = [16, 128], strides = [1, 1]} : vector<20x128xf32> to vector<16x128xf32>
    %150 = vector.broadcast %9 : f32 to vector<16x128xf32>
    %151 = arith.mulf %150, %149 : vector<16x128xf32>
    %152 = arith.addf %148, %151 : vector<16x128xf32>
    %153 = vector.extract_strided_slice %144 {offsets = [2, 0], sizes = [16, 128], strides = [1, 1]} : vector<20x128xf32> to vector<16x128xf32>
    %154 = vector.broadcast %14 : f32 to vector<16x128xf32>
    %155 = arith.mulf %154, %153 : vector<16x128xf32>
    %156 = arith.addf %152, %155 : vector<16x128xf32>
    %157 = vector.extract_strided_slice %144 {offsets = [3, 0], sizes = [16, 128], strides = [1, 1]} : vector<20x128xf32> to vector<16x128xf32>
    %158 = vector.broadcast %19 : f32 to vector<16x128xf32>
    %159 = arith.mulf %158, %157 : vector<16x128xf32>
    %160 = arith.addf %156, %159 : vector<16x128xf32>
    %161 = vector.extract_strided_slice %144 {offsets = [4, 0], sizes = [16, 128], strides = [1, 1]} : vector<20x128xf32> to vector<16x128xf32>
    %162 = vector.broadcast %24 : f32 to vector<16x128xf32>
    %163 = arith.mulf %162, %161 : vector<16x128xf32>
    %164 = arith.addf %160, %163 : vector<16x128xf32>
    %165 = vector.extract_strided_slice %164 {offsets = [0, 0], sizes = [16, 16], strides = [1, 1]} : vector<16x128xf32> to vector<16x16xf32>
    %166 = arith.index_cast %c0_i32 : i32 to index
    %167 = arith.index_cast %55 : i32 to index
    %c0_18 = arith.constant 0 : index
    %168 = vector.load %arg3[%166, %167, %c0_18] : memref<1x16x16xf32, #tpu.memory_space<vmem>>, vector<1x16x16xf32>
    %169 = vector.shape_cast %168 : vector<1x16x16xf32> to vector<16x16xf32>
    %170 = vector.shape_cast %165 : vector<16x16xf32> to vector<1x16x16xf32>
    tpu.vector_store %arg3[%166, %167, %c0_18], %170 {strides = array<i32>} : memref<1x16x16xf32, #tpu.memory_space<vmem>>, vector<1x16x16xf32>,
    %c1_i32_19 = arith.constant 1 : i32
    %c1_i32_20 = arith.constant 1 : i32
    return
  }
  func.func @transform_0(%arg0: i32) -> i32 {
    %c0_i32 = arith.constant 0 : i32
    %c0_i32_0 = arith.constant 0 : i32
    return %c0_i32 : i32
  }
  func.func @transform_1(%arg0: i32) -> (i32, i32, i32) {
    %c0_i32 = arith.constant 0 : i32
    %c0_i32_0 = arith.constant 0 : i32
    %c0_i32_1 = arith.constant 0 : i32
    return %arg0, %c0_i32, %c0_i32_0 : i32, i32, i32
  }
  func.func @transform_2(%arg0: i32) -> (i32, i32, i32) {
    %c0_i32 = arith.constant 0 : i32
    %c0_i32_0 = arith.constant 0 : i32
    %c0_i32_1 = arith.constant 0 : i32
    return %arg0, %c0_i32, %c0_i32_0 : i32, i32, i32
  }
}

</mosaic_0001>

<bundles_post_ra>
// kernel: conv_with_mask.1
= control target key start
LH: loop header
LB: loop body
LE: loop exit
PB: predicated region body
PF: predicated region fallthrough
CT: control target
= control target key end

     0   :  { %7 = vsyncpa [#allocation6], 0  ;;  %s1350_s0 = inlined_call_operand.vmem [shape: f32[25], index: 0, kind: input, shape index: {}]   ;;  %s1351_s1 = inlined_call_operand.hbm [shape: f32[2,16,16], index: 1, kind: input, shape index: {}]   ;;  %s1352_s2 = inlined_call_operand.hbm [shape: f32[2,16,16], index: 2, kind: output, shape index: {}]  }
   0x1   :  { %8 = vsyncpa [#allocation4], 0 }
   0x2   :  { %10 = vsyncpa [#allocation4 + $0x1], 0 }
   0x3   :  { %11 = vsyncpa [#allocation5], 0 }
   0x4   :  { %13 = vsyncpa [#allocation5 + $0x1], 0  ;;  %s942_s9 = smov 0   ;;  %s944_s10 = smov 0  }
   0x5   :  { %s946_s11 = smov 0   ;;  %s948_s12 = smov 0  }
   0x6 LB: > { %s963_s13 = sadd.s32 4294967295, %s915_s12   ;;  %s692_s14 = sadd.s32 4294967294, %s915_s12   ;;  %s915_s12 = sphi %s948_s12, %s1363_s12   ;;  %s911_s11 = sphi %s946_s11, %s1362_s11   ;;  %s907_s10 = sphi %s944_s10, %s1361_s10   ;;  %s903_s9 = sphi %s942_s9, %s1360_s9  }
   0x7   : > { %s967_s15 = sadd.s32 1, %s915_s12   ;;  %s47_s16 = sadd.s32 1, %s911_s11 }
   0x8   : > { %s44_s17 = ssub.s32 %s915_s12, %s967_s15  ;;  %p54_p0 = scmp.ne.s32.totalorder %s911_s11, %s907_s10 }
   0x9   : > { %p45_p1 = scmp.eq.s32.totalorder %s44_s17, 0  ;;  %p55_p2 = scmp.eq.s32.totalorder %s915_s12, 0 }
   0xa   : > { %p60_p3 = scmp.ne.s32.totalorder %s907_s10, %s903_s9  ;;  %p61_p4 = scmp.eq.s32.totalorder %s963_s13, 0 }
   0xb   : > { %s979_s18 = scalar_select %p45_p1, %s911_s11, %s47_s16  }
   0xc   : > { %p981_p5 = por %p55_p2, %p54_p0  ;;  %p987_p6 = por %p61_p4, %p60_p3 }
   0xd   : > { %p84_p7 = scmp.eq.s32.totalorder %s963_s13, 1  ;;  %p90_p8 = scmp.eq.s32.totalorder %s692_s14, 1 }
   0xe   : > { %p693_p9 = scmp.ge.s32.totalorder %s915_s12, 1  ;;  %p97_p10 = scmp.lt.s32.totalorder %s915_s12, 3 }
   0xf   : > { %p994_p11 = por %p84_p7, %p54_p0  ;;  %p998_p12 = por %p90_p8, %p60_p3 }
  0x10   : > { %p1002_p13 = pnand %p693_p9, %p97_p10  ;;  %s109_s26 = sshll.u32 %s1350_s0, 4  ;;  %s110_s26 = int_to_ptr.vmem [resolvable:$true] %s109_s26 }
  0x11   : > { %p755_p2 = scmp.lt.s32.totalorder %s915_s12, 2  ;;  %s120_s27 = sand.u32 1, %s911_s11  }
  0x12   : > { %p742_p1 = pneg %p1002_p13  ;;  %s696_s29 = sshll.u32 %s120_s27, 4 }
  0x13   : > { %p1018_p3 = pnand %p755_p2, %p981_p5  ;;  %s917_s30 = smov [#allocation3]  }
  0x14   : > { %p743_p7 = pnand %p742_p1, %p61_p4  ;;  %s732_s3 = sshll.u32 %s915_s12, 4 }
  0x15   : > { %s124_s4 = scalar_lea.vmem [#allocation7], %s696_s29  ;;  %s129_s8 = scalar_lea.hbm %s1351_s1, %s732_s3 }
  0x16   : > { %745 = dma.vmem_to_smem (!%p743_p7), %s110_s26, 16, %s917_s30, [#allocation6]  }
  0x17   : > { %s132_s5 = sshll.u32 %s124_s4, 4  ;;  %s130_s14 = sshll.u32 %s129_s8, 4  ;;  %s133_s5 = int_to_ptr.vmem [resolvable:$true] %s132_s5  ;;  %s131_s14 = int_to_ptr.hbm [resolvable:$true] %s130_s14 }
  0x18   : > { %s121_s16 = scalar_lea.sflag [#allocation4], %s120_s27  ;;  %s815_s17 = sshra.s32 %s131_s14, 4  ;;  %s816_s17 = int_to_ptr.hbm [resolvable:$true] %s815_s17 }
  0x19   : > { %s817_s19 = scalar_lea.hbm %s816_s17, 16  ;;  %p819_p8 = pneg %p1018_p3 }
  0x1a   : > { %p818_p5 = scmp.ne.s32.totalorder %s816_s17, %s817_s19  ;;  %s822_s26 = scalar_lea.hbm %s1351_s1, 32 }
  0x1b   : > { %p823_p1 = scmp.lt.s32.totalorder %s816_s17, %s1351_s1  ;;  %p824_p2 = scmp.lt.s32.totalorder %s822_s26, %s817_s19 }
  0x1c   : > { %p820_p9 = pnand %p819_p8, %p818_p5 }
  0x1d   : > { %p825_p7 = por %p824_p2, %p823_p1 }
  0x1e   : > { %p821_p10 = pneg %p820_p9 }
  0x20   : > { %p826_p0 = pnand %p825_p7, %p821_p10 }
  0x22   : > { %829 = shalt.err (!%p826_p0)
}
  0x23   : > { %s918_s27 = smov 128   ;;  %s919_s3 = smov 8  }
  0x24   : > { %749 = dma.hbm_to_vmem [thread:$0]  (!%p1018_p3), %s131_s14, 256, %s133_s5, %s121_s16, %s918_s27, %s918_s27, %s919_s3  }
  0x25   : > { %144 = sbr.rel (%p1002_p13) target bundleno = 241 (0xf1), region = 28 }
  0x2a   : > { %890 = dma.done.wait (%p61_p4), [#allocation6], 16  }
  0x2b   : > { %892 = vsyncadd (%p61_p4), [#allocation6], 4294967280  ;;  %s1043_s4 = sand.u32 1, %s907_s10  }
  0x2c   : > { %s701_s6 = sshll.u32 %s1043_s4, 4  ;;  %s152_s7 = scalar_lea.sflag [#allocation4], %s1043_s4 }
  0x2d   : > { %s155_s28 = scalar_lea.vmem [#allocation7], %s701_s6 }
  0x2e   : > { %894 = dma.done.wait (%p987_p6), %s152_s7, 256  }
  0x2f   : > { %896 = vsyncadd (%p987_p6), %s152_s7, 4294967040 }
  0x30   : > { %161 = sfence }
  0x31   : > { %v205_v0 = vld [vmem:[%s155_s28] sm:$0xff]  ;;  %vm207_vm0 = vcmask 130048   ;;  %vm210_vm1 = vcmask 1047680   ;;  %v920_v1 = vmov 0.0   ;;  %v206_v2 = vld [vmem:[%s155_s28 + $0x8] sm:$0xff]  ;;  %s921_s23 = smov 2  }
  0x32   : > { %203 = vst [vmem:[#allocation2] sm:$0x3] %v920_v1  ;;  %s922_s20 = smov 1   ;;  %s923_s5 = smov 127   ;;  %vm234_vm2 = vcmask 1046528   ;;  %vm251_vm3 = vcmask 1045504  }
  0x33   : > { %208 = vst.msk [vmem:[#allocation2 + $0x2] sm:$0xff] %vm207_vm0, %v205_v0  ;;  %s924_s8 = smov 126   ;;  %s708_s14 = sld [smem:[#allocation3 + $0x6]]  ;;  %vm268_vm4 = vcmask 1044480   ;;  %vm285_vm5 = vcmask 1043456  }
  0x34   : > { %211 = vst.msk [vmem:[#allocation2 + $0x2] sm:$0xff] %vm210_vm1, %v920_v1  ;;  %s713_s16 = sld [smem:[#allocation3 + $0xb]] }
  0x35   : > { %204 = vst [vmem:[#allocation2 + $0x12] sm:$0x3] %v920_v1  ;;  %s718_s17 = sld [smem:[#allocation3 + $0x10]] }
  0x36   : > { %209 = vst.msk [vmem:[#allocation2 + $0xa] sm:$0xff] %vm207_vm0, %v206_v2  ;;  %s723_s19 = sld [smem:[#allocation3 + $0x15]] }
  0x37   : > { %212 = vst.msk [vmem:[#allocation2 + $0xa] sm:$0xff] %vm210_vm1, %v920_v1  ;;  %s1073_s24 = sld [smem:[#allocation3]] }
  0x38   : > { %s1075_s25 = sld [smem:[#allocation3 + $0x1]] }
  0x39   : > { %s707_s26 = sld [smem:[#allocation3 + $0x5]]  ;;  %v1079_v7 = vstv %s708_s14 }
  0x3a   : > { %s712_s29 = sld [smem:[#allocation3 + $0xa]]  ;;  %v1083_v9 = vstv %s713_s16 }
  0x3b   : > { %v1055_v3 = vld [vmem:[#allocation2] sm:$0xff]  ;;  %s1077_s30 = sld [smem:[#allocation3 + $0xf]]  ;;  %v1087_v10 = vstv %s718_s17 }
  0x3c   : > { %216 = vrot.lane.b32.xlu0 %v1055_v3, %s921_s23  ;;  %s709_s27 = sld [smem:[#allocation3 + $0x7]]  ;;  %v1089_v11 = vstv %s723_s19 }
  0x3d   : > { %s1081_s3 = sld [smem:[#allocation3 + $0x14]]  ;;  %v222_v20 = vstv %s1073_s24 }
  0x3e   : > { %v1058_v4 = vld [vmem:[#allocation2 + $0x10] sm:$0xf]  ;;  %v1060_v5 = vld [vmem:[#allocation2 + $0x8] sm:$0xff]  ;;  %s1085_s7 = sld [smem:[#allocation3 + $0x2]]  ;;  %v301_v21 = vstv %s1075_s25 }
  0x3f   : > { %220 = vrot.lane.b32.xlu1 %v1058_v4, %s921_s23  ;;  %297 = vrot.lane.b32.xlu2 %v1060_v5, %s922_s20  ;;  %v227_v22 = vstv %s707_s26  ;;  %s1113_s28 = sld [smem:[#allocation3 + $0x8]] }
  0x40   : > { %v244_v23 = vstv %s712_s29  ;;  %s1189_s14 = sld [smem:[#allocation3 + $0x11]] }
  0x41   : > { %v261_v34 = vstv %s1077_s30  ;;  %s1197_s16 = sld [smem:[#allocation3 + $0x16]]  ;;  %s733_s30 = sshll.u32 %s963_s13, 4 }
  0x42   : > { %v1111_v29 = vstv %s709_s27  ;;  %s1222_s17 = sld [smem:[#allocation3 + $0x3]]  ;;  %s177_s13 = scalar_lea.vmem [#allocation8], %s701_s6 }
  0x43   : > { %v278_v35 = vstv %s1081_s3  ;;  %v1124_v38 = vmul.f32 %v1111_v29, %v1060_v5  ;;  %v1142_v42 = vmul.f32 %v1111_v29, %v1058_v4  ;;  %s1252_s19 = sld [smem:[#allocation3 + $0x9]] }
  0x44   : > { %218 = vrot.lane.b32.xlu0 %v1060_v5, %s921_s23  ;;  %v370_v36 = vstv %s1085_s7  ;;  %s1120_s23 = sld [smem:[#allocation3 + $0xd]]  ;;  %s603_s7 = scalar_lea.hbm %s1352_s2, %s733_s30 }
  0x45   : > { %v1155_v46 = vmul.f32 %v370_v36, %v1055_v3  ;;  %v1158_v50 = vmul.f32 %v370_v36, %v1060_v5  ;;  %v383_v54 = vrot.slane %v1124_v38, 1  ;;  %v385_v58 = vrot.slane %v1142_v42, 1  ;;  %s1257_s24 = sld [smem:[#allocation3 + $0xe]] }
  0x46   : > { %v1171_v59 = vstv %s1113_s28  ;;  %s1270_s25 = sld [smem:[#allocation3 + $0x13]]  ;;  %s604_s28 = sshll.u32 %s177_s13, 4  ;;  %s605_s28 = int_to_ptr.vmem [resolvable:$true] %s604_s28 }
  0x47   : > { %295 = vrot.lane.b32.xlu1 %v1055_v3, %s922_s20  ;;  %299 = vrot.lane.b32.xlu2 %v1058_v4, %s922_s20  ;;  %s1160_s20 = sld [smem:[#allocation3 + $0x12]] }
  0x48   : > { %s1275_s26 = sld [smem:[#allocation3 + $0x18]] }
  0x49   : > { %s1281_s29 = sld [smem:[#allocation3 + $0x4]] }
  0x4c   : > { %439 = vrot.lane.b32.xlu0 %v1055_v3, %s923_s5 }
  0x4f   : > { %441 = vrot.lane.b32.xlu1 %v1060_v5, %s923_s5  ;;  %443 = vrot.lane.b32.xlu2 %v1058_v4, %s923_s5  ;;  %s1165_s5 = sld [smem:[#allocation3 + $0xc]] }
  0x54   : > { %514 = vrot.lane.b32.xlu0 %v1055_v3, %s924_s8 }
  0x57   : > { %516 = vrot.lane.b32.xlu1 %v1060_v5, %s924_s8  ;;  %518 = vrot.lane.b32.xlu2 %v1058_v4, %s924_s8  ;;  %s1168_s8 = sld [smem:[#allocation3 + $0x17]] }
  0x99   : > { %v298_v6 = vpop.permute.xlu2 %297 }
  0x9a   : > { %v1092_v12 = vmul.f32 %v1079_v7, %v298_v6  ;;  %v1096_v14 = vmul.f32 %v1083_v9, %v298_v6  ;;  %v1100_v16 = vmul.f32 %v1087_v10, %v298_v6  ;;  %v1104_v18 = vmul.f32 %v1089_v11, %v298_v6 }
  0x9b   : > { %v1128_v39 = vmul.f32 %v301_v21, %v298_v6 }
  0x9c   : > { %v314_v24 = vrot.slane %v1092_v12, 1  ;;  %v330_v27 = vrot.slane %v1096_v14, 2  ;;  %v346_v30 = vrot.slane %v1100_v16, 3  ;;  %v362_v32 = vrot.slane %v1104_v18, 4 }
  0xa1   : > { %v300_v8 = vpop.permute.xlu2 %299 }
  0xa2   : > { %v309_v13 = vmul.f32 %v1079_v7, %v300_v8  ;;  %v325_v15 = vmul.f32 %v1083_v9, %v300_v8  ;;  %v341_v17 = vmul.f32 %v1087_v10, %v300_v8  ;;  %v357_v19 = vmul.f32 %v1089_v11, %v300_v8 }
  0xa3   : > { %v1174_v8 = vstv %s1120_s23  ;;  %s606_s23 = sshll.u32 %s603_s7, 4  ;;  %s607_s23 = int_to_ptr.hbm [resolvable:$true] %s606_s23 }
  0xa4   : > { %v316_v26 = vrot.slane %v309_v13, 1  ;;  %v332_v28 = vrot.slane %v325_v15, 2  ;;  %v348_v31 = vrot.slane %v341_v17, 3  ;;  %v364_v33 = vrot.slane %v357_v19, 4 }
  0xa6   : > { %v1133_v40 = vsel %vm234_vm2, %v314_v24, %v316_v26  ;;  %v1138_v41 = vsel %vm251_vm3, %v330_v27, %v332_v28  ;;  %v1147_v44 = vsel %vm268_vm4, %v346_v30, %v348_v31  ;;  %v1152_v45 = vsel %vm285_vm5, %v362_v32, %v364_v33 }
  0xa9   : > { %v444_v0 = vpop.permute.xlu2 %443 }
  0xae   : > { %v217_v25 = vpop.permute.xlu0 %216 }
  0xaf   : > { %v228_v47 = vmul.f32 %v227_v22, %v217_v25  ;;  %v245_v48 = vmul.f32 %v244_v23, %v217_v25  ;;  %v262_v49 = vmul.f32 %v261_v34, %v217_v25  ;;  %v223_v51 = vmul.f32 %v222_v20, %v217_v25 }
  0xb0   : > { %v279_v53 = vmul.f32 %v278_v35, %v217_v25 }
  0xb1   : > { %v221_v37 = vpop.permute.xlu1 %220  ;;  %v235_v1 = vrot.slane %v228_v47, 1  ;;  %v252_v2 = vrot.slane %v245_v48, 2  ;;  %v269_v6 = vrot.slane %v262_v49, 3 }
  0xb2   : > { %v230_v43 = vmul.f32 %v227_v22, %v221_v37  ;;  %v247_v52 = vmul.f32 %v244_v23, %v221_v37  ;;  %v264_v55 = vmul.f32 %v261_v34, %v221_v37  ;;  %v281_v56 = vmul.f32 %v278_v35, %v221_v37 }
  0xb3   : > { %v286_v26 = vrot.slane %v279_v53, 4 }
  0xb4   : > { %v238_v60 = vrot.slane %v230_v43, 1  ;;  %v255_v13 = vrot.slane %v247_v52, 2  ;;  %v272_v25 = vrot.slane %v264_v55, 3  ;;  %v1187_v43 = vstv %s1160_s20  ;;  %s592_s20 = scalar_lea.sflag [#allocation5], %s1043_s4 }
  0xb5   : > { %v1195_v55 = vstv %s1168_s8 }
  0xb6   : > { %v219_v57 = vpop.permute.xlu0 %218 }
  0xb7   : > { %v229_v61 = vmul.f32 %v227_v22, %v219_v57  ;;  %v246_v62 = vmul.f32 %v244_v23, %v219_v57  ;;  %v263_v63 = vmul.f32 %v261_v34, %v219_v57  ;;  %v280_v19 = vmul.f32 %v278_v35, %v219_v57 }
  0xb8   : > { %v224_v28 = vmul.f32 %v222_v20, %v219_v57  ;;  %v1179_v22 = vmul.f32 %v1171_v59, %v444_v0  ;;  %v289_v23 = vrot.slane %v281_v56, 4  ;;  %v1184_v35 = vmul.f32 %v1174_v8, %v444_v0 }
  0xb9   : > { %v236_v15 = vrot.slane %v229_v61, 1  ;;  %v253_v17 = vrot.slane %v246_v62, 2  ;;  %v296_v31 = vpop.permute.xlu1 %295  ;;  %v270_v36 = vrot.slane %v263_v63, 3  ;;  %v287_v48 = vrot.slane %v280_v19, 4 }
  0xba   : > { %v307_v49 = vmul.f32 %v1079_v7, %v296_v31  ;;  %v1204_v61 = vmul.f32 %v1187_v43, %v444_v0  ;;  %v302_v7 = vmul.f32 %v301_v21, %v296_v31  ;;  %v1218_v21 = vmul.f32 %v1195_v55, %v444_v0 }
  0xbb   : > { %v237_v33 = vsel %vm234_vm2, %v235_v1, %v236_v15  ;;  %v239_v34 = vsel %vm234_vm2, %v236_v15, %v238_v60  ;;  %v254_v20 = vsel %vm251_vm3, %v252_v2, %v253_v17  ;;  %v256_v47 = vsel %vm251_vm3, %v253_v17, %v255_v13 }
  0xbc   : > { %v242_v37 = vadd.f32 %v237_v33, %v223_v51  ;;  %v243_v42 = vadd.f32 %v239_v34, %v224_v28  ;;  %v391_v51 = vstv %s1165_s5  ;;  %v271_v56 = vsel %vm268_vm4, %v269_v6, %v270_v36  ;;  %s859_s5 = sshra.s32 %s607_s23, 4  ;;  %s860_s5 = int_to_ptr.hbm [resolvable:$true] %s859_s5 }
  0xbd   : > { %v273_v57 = vsel %vm268_vm4, %v270_v36, %v272_v25  ;;  %v323_v60 = vmul.f32 %v1083_v9, %v296_v31  ;;  %v339_v1 = vmul.f32 %v1087_v10, %v296_v31  ;;  %v290_v2 = vsel %vm285_vm5, %v287_v48, %v289_v23  ;;  %s861_s6 = scalar_lea.hbm %s860_s5, 16  ;;  %p866_p0 = scmp.lt.s32.totalorder %s860_s5, %s1352_s2 }
  0xbe   : > { %v259_v52 = vadd.f32 %v254_v20, %v242_v37  ;;  %v260_v53 = vadd.f32 %v256_v47, %v243_v42  ;;  %v288_v13 = vsel %vm285_vm5, %v286_v26, %v287_v48  ;;  %v313_v15 = vrot.slane %v307_v49, 1  ;;  %p862_p4 = scmp.ne.s32.totalorder %s860_s5, %s861_s6 }
  0xbf   : > { %v393_v6 = vmul.f32 %v391_v51, %v1060_v5  ;;  %v386_v9 = vsel %vm234_vm2, %v383_v54, %v385_v58  ;;  %v355_v25 = vmul.f32 %v1089_v11, %v296_v31  ;;  %v329_v28 = vrot.slane %v323_v60, 2 }
  0xc0   : > { %v277_v62 = vadd.f32 %v273_v57, %v260_v53  ;;  %v276_v63 = vadd.f32 %v271_v56, %v259_v52  ;;  %v460_v10 = vrot.slane %v1179_v22, 1  ;;  %v394_v26 = vmul.f32 %v391_v51, %v1058_v4  ;;  %p863_p6 = pnand %p862_p4, %p994_p11 }
  0xc1   : > { %v345_v34 = vrot.slane %v339_v1, 3  ;;  %v407_v36 = vstv %s1189_s14  ;;  %v315_v11 = vsel %vm234_vm2, %v313_v15, %v314_v24  ;;  %v476_v58 = vrot.slane %v1184_v35, 2  ;;  %v442_v56 = vpop.permute.xlu1 %441 }
  0xc2   : > { %v294_v17 = vadd.f32 %v290_v2, %v277_v62  ;;  %v293_v19 = vadd.f32 %v288_v13, %v276_v63  ;;  %v492_v31 = vrot.slane %v1204_v61, 3  ;;  %v399_v37 = vrot.slane %v393_v6, 2  ;;  %v440_v2 = vpop.permute.xlu0 %439  ;;  %p864_p13 = pneg %p863_p6 }
  0xc3   : > { %v361_v20 = vrot.slane %v355_v25, 4  ;;  %v423_v47 = vstv %s1197_s16  ;;  %v409_v48 = vmul.f32 %v407_v36, %v1060_v5  ;;  %v410_v12 = vmul.f32 %v407_v36, %v1058_v4  ;;  %s865_s16 = scalar_lea.hbm %s1352_s2, 32 }
  0xc4   : > { %v305_v23 = vadd.f32 %v1128_v39, %v294_v17  ;;  %v304_v33 = vadd.f32 %v302_v7, %v293_v19  ;;  %v331_v39 = vsel %vm251_vm3, %v329_v28, %v330_v27  ;;  %v376_v24 = vmul.f32 %v1111_v29, %v1055_v3  ;;  %p867_p3 = scmp.lt.s32.totalorder %s865_s16, %s861_s6 }
  0xc5   : > { %v401_v53 = vrot.slane %v394_v26, 2  ;;  %v425_v14 = vmul.f32 %v423_v47, %v1060_v5  ;;  %v426_v27 = vmul.f32 %v423_v47, %v1058_v4  ;;  %v392_v60 = vmul.f32 %v391_v51, %v1055_v3 }
  0xc6   : > { %v321_v0 = vadd.f32 %v1133_v40, %v305_v23  ;;  %v320_v42 = vadd.f32 %v315_v11, %v304_v33  ;;  %v347_v40 = vsel %vm268_vm4, %v345_v34, %v346_v30  ;;  %v382_v57 = vrot.slane %v376_v24, 1  ;;  %p868_p5 = por %p867_p3, %p866_p0 }
  0xc7   : > { %v408_v16 = vmul.f32 %v407_v36, %v1055_v3  ;;  %v415_v30 = vrot.slane %v409_v48, 3  ;;  %v417_v63 = vrot.slane %v410_v12, 3  ;;  %v398_v7 = vrot.slane %v392_v60, 2 }
  0xc8   : > { %v337_v49 = vadd.f32 %v1138_v41, %v321_v0  ;;  %v336_v52 = vadd.f32 %v331_v39, %v320_v42  ;;  %v363_v41 = vsel %vm285_vm5, %v361_v20, %v362_v32  ;;  %v424_v1 = vmul.f32 %v423_v47, %v1055_v3  ;;  %v519_v47 = vpop.permute.xlu2 %518  ;;  %p869_p8 = pnand %p868_p5, %p864_p13 }
  0xc9   : > { %v445_v51 = vstv %s1222_s17  ;;  %v431_v18 = vrot.slane %v425_v14, 4  ;;  %v433_v32 = vrot.slane %v426_v27, 4  ;;  %v384_v13 = vsel %vm234_vm2, %v382_v57, %v383_v54 }
  0xca   : > { %v353_v62 = vadd.f32 %v1147_v44, %v337_v49  ;;  %v352_v29 = vadd.f32 %v347_v40, %v336_v52  ;;  %v452_v44 = vmul.f32 %v1171_v59, %v442_v56  ;;  %v414_v15 = vrot.slane %v408_v16, 3 }
  0xcb   : > { %v402_v17 = vsel %vm251_vm3, %v399_v37, %v401_v53  ;;  %v468_v19 = vmul.f32 %v1174_v8, %v442_v56  ;;  %v400_v25 = vsel %vm251_vm3, %v398_v7, %v399_v37  ;;  %v430_v28 = vrot.slane %v424_v1, 4 }
  0xcc   : > { %v369_v4 = vadd.f32 %v1152_v45, %v353_v62  ;;  %v368_v5 = vadd.f32 %v363_v41, %v352_v29  ;;  %v508_v45 = vrot.slane %v1218_v21, 4  ;;  %v451_v26 = vmul.f32 %v1171_v59, %v440_v2  ;;  %v515_v41 = vpop.permute.xlu0 %514 }
  0xcd   : > { %v418_v38 = vsel %vm268_vm4, %v415_v30, %v417_v63  ;;  %v447_v54 = vmul.f32 %v445_v51, %v442_v56  ;;  %v416_v34 = vsel %vm268_vm4, %v414_v15, %v415_v30  ;;  %v467_v36 = vmul.f32 %v1174_v8, %v440_v2 }
  0xce   : > { %v374_v3 = vadd.f32 %v1158_v50, %v369_v4  ;;  %v373_v6 = vadd.f32 %v1155_v46, %v368_v5  ;;  %v434_v46 = vsel %vm285_vm5, %v431_v18, %v433_v32  ;;  %v458_v50 = vrot.slane %v452_v44, 1 }
  0xcf   : > { %v484_v59 = vmul.f32 %v1187_v43, %v442_v56  ;;  %v474_v0 = vrot.slane %v468_v19, 2  ;;  %v432_v42 = vsel %vm285_vm5, %v430_v28, %v431_v18  ;;  %v457_v20 = vrot.slane %v451_v26, 1 }
  0xd0   : > { %v390_v23 = vadd.f32 %v386_v9, %v374_v3  ;;  %v389_v33 = vadd.f32 %v384_v13, %v373_v6  ;;  %v500_v9 = vmul.f32 %v1195_v55, %v442_v56  ;;  %v525_v39 = vstv %s1252_s19  ;;  %v517_v56 = vpop.permute.xlu1 %516 }
  0xd1   : > { %v446_v24 = vmul.f32 %v445_v51, %v440_v2  ;;  %v541_v8 = vstv %s1257_s24  ;;  %v461_v49 = vsel %vm234_vm2, %v458_v50, %v460_v10  ;;  %v473_v52 = vrot.slane %v467_v36, 2 }
  0xd2   : > { %v406_v11 = vadd.f32 %v402_v17, %v390_v23  ;;  %v405_v37 = vadd.f32 %v400_v25, %v389_v33  ;;  %v483_v40 = vmul.f32 %v1187_v43, %v440_v2  ;;  %v499_v53 = vmul.f32 %v1195_v55, %v440_v2 }
  0xd3   : > { %v490_v27 = vrot.slane %v484_v59, 3  ;;  %v528_v60 = vmul.f32 %v525_v39, %v519_v47  ;;  %v477_v62 = vsel %vm251_vm3, %v474_v0, %v476_v58  ;;  %v506_v29 = vrot.slane %v500_v9, 4 }
  0xd4   : > { %v422_v48 = vadd.f32 %v418_v38, %v406_v11  ;;  %v421_v12 = vadd.f32 %v416_v34, %v405_v37  ;;  %v459_v22 = vsel %vm234_vm2, %v457_v20, %v458_v50  ;;  %v544_v10 = vmul.f32 %v541_v8, %v519_v47 }
  0xd5   : > { %v557_v30 = vstv %s1270_s25  ;;  %v527_v55 = vmul.f32 %v525_v39, %v517_v56  ;;  %v475_v63 = vsel %vm251_vm3, %v473_v52, %v474_v0  ;;  %v489_v7 = vrot.slane %v483_v40, 3 }
  0xd6   : > { %v438_v14 = vadd.f32 %v434_v46, %v422_v48  ;;  %v437_v57 = vadd.f32 %v432_v42, %v421_v12  ;;  %v505_v1 = vrot.slane %v499_v53, 4  ;;  %v573_v4 = vstv %s1275_s26 }
  0xd7   : > { %v535_v35 = vrot.slane %v528_v60, 1  ;;  %v526_v44 = vmul.f32 %v525_v39, %v515_v41  ;;  %v551_v58 = vrot.slane %v544_v10, 2  ;;  %v560_v2 = vmul.f32 %v557_v30, %v519_v47 }
  0xd8   : > { %v449_v16 = vadd.f32 %v447_v54, %v438_v14  ;;  %v448_v43 = vadd.f32 %v446_v24, %v437_v57  ;;  %v493_v18 = vsel %vm268_vm4, %v490_v27, %v492_v31  ;;  %v520_v32 = vstv %s1281_s29 }
  0xd9   : > { %v576_v13 = vmul.f32 %v573_v4, %v519_v47  ;;  %v533_v3 = vrot.slane %v527_v55, 1  ;;  %v543_v17 = vmul.f32 %v541_v8, %v517_v56  ;;  %v491_v19 = vsel %vm268_vm4, %v489_v7, %v490_v27 }
  0xda   : > { %v465_v5 = vadd.f32 %v461_v49, %v449_v16  ;;  %v464_v51 = vadd.f32 %v459_v22, %v448_v43  ;;  %v532_v25 = vrot.slane %v526_v44, 1  ;;  %v542_v28 = vmul.f32 %v541_v8, %v515_v41 }
  0xdb   : > { %v522_v23 = vmul.f32 %v520_v32, %v517_v56  ;;  %v521_v54 = vmul.f32 %v520_v32, %v515_v41  ;;  %v509_v61 = vsel %vm285_vm5, %v506_v29, %v508_v45  ;;  %v559_v31 = vmul.f32 %v557_v30, %v517_v56 }
  0xdc   : > { %v481_v15 = vadd.f32 %v477_v62, %v465_v5  ;;  %v480_v6 = vadd.f32 %v475_v63, %v464_v51  ;;  %v507_v33 = vsel %vm285_vm5, %v505_v1, %v506_v29  ;;  %v558_v46 = vmul.f32 %v557_v30, %v515_v41 }
  0xdd   : > { %v536_v34 = vsel %vm234_vm2, %v533_v3, %v535_v35  ;;  %v575_v36 = vmul.f32 %v573_v4, %v517_v56  ;;  %v549_v59 = vrot.slane %v543_v17, 2  ;;  %v534_v9 = vsel %vm234_vm2, %v532_v25, %v533_v3 }
  0xde   : > { %v497_v26 = vadd.f32 %v493_v18, %v481_v15  ;;  %v496_v38 = vadd.f32 %v491_v19, %v480_v6  ;;  %v548_v37 = vrot.slane %v542_v28, 2  ;;  %v574_v0 = vmul.f32 %v573_v4, %v515_v41 }
  0xdf   : > { %v567_v21 = vrot.slane %v560_v2, 3  ;;  %v565_v45 = vrot.slane %v559_v31, 3  ;;  %v564_v47 = vrot.slane %v558_v46, 3  ;;  %v583_v39 = vrot.slane %v576_v13, 4 }
  0xe0   : > { %v513_v50 = vadd.f32 %v509_v61, %v497_v26  ;;  %v512_v11 = vadd.f32 %v507_v33, %v496_v38  ;;  %v552_v24 = vsel %vm251_vm3, %v549_v59, %v551_v58  ;;  %v581_v8 = vrot.slane %v575_v36, 4 }
  0xe1   : > { %v550_v49 = vsel %vm251_vm3, %v548_v37, %v549_v59  ;;  %v580_v52 = vrot.slane %v574_v0, 4  ;;  %v568_v56 = vsel %vm268_vm4, %v565_v45, %v567_v21  ;;  %v566_v14 = vsel %vm268_vm4, %v564_v47, %v565_v45 }
  0xe2   : > { %v524_v42 = vadd.f32 %v522_v23, %v513_v50  ;;  %v523_v20 = vadd.f32 %v521_v54, %v512_v11  ;;  %v584_v60 = vsel %vm285_vm5, %v581_v8, %v583_v39 }
  0xe3   : > { %v582_v62 = vsel %vm285_vm5, %v580_v52, %v581_v8 }
  0xe4   : > { %v540_v48 = vadd.f32 %v536_v34, %v524_v42  ;;  %v539_v12 = vadd.f32 %v534_v9, %v523_v20 }
  0xe6   : > { %v556_v40 = vadd.f32 %v552_v24, %v540_v48  ;;  %v555_v53 = vadd.f32 %v550_v49, %v539_v12 }
  0xe8   : > { %v572_v27 = vadd.f32 %v568_v56, %v556_v40  ;;  %v571_v57 = vadd.f32 %v566_v14, %v555_v53 }
  0xea   : > { %v588_v29 = vadd.f32 %v584_v60, %v572_v27  ;;  %v587_v22 = vadd.f32 %v582_v62, %v571_v57 }
  0xec   : > { %589 = vst.msk [vmem:[%s177_s13] sm:$0xff] %vm207_vm0, %v587_v22 }
  0xed   : > { %590 = vst.msk [vmem:[%s177_s13 + $0x8] sm:$0xff] %vm207_vm0, %v588_v29 }
  0xee   : > { %872 = shalt.err (!%p869_p8)
}
  0xef   : > { %s925_s4 = smov 128   ;;  %s926_s24 = smov 8  }
  0xf0   : > { %740 = dma.vmem_to_hbm [thread:$0]  (%p994_p11), %s605_s28, 256, %s607_s23, %s592_s20, %s925_s4, %s925_s4, %s926_s24  }
  0xf1 PF: > { %s621_s25 = sand.u32 1, %s903_s9   ;;  %p1359_p9 = scmp.ge.s32.totalorder %s915_s12, 2 }
  0xf2   : > { %s622_s26 = scalar_lea.sflag [#allocation5], %s621_s25 }
  0xf3   : > { %p751_p10 = pnand %p1359_p9, %p998_p12 }
  0xf5   : > { %p752_p1 = pneg %p751_p10 }
  0xf7   : > { %898 = dma.done.wait (%p752_p1), %s622_s26, 256  }
  0xf8   : > { %900 = vsyncadd (%p752_p1), %s622_s26, 4294967040  ;;  %p16_p2 = scmp.ge.s32.totalorder %s967_s15, 4   ;;  %s1360_s9 = smov %s907_s10 }
  0xf9   : > { %s1361_s10 = smov %s911_s11  ;;  %s1362_s11 = smov %s979_s18 }
  0xfa   : > { %s1363_s12 = smov %s967_s15  ;;  %18 = sbr.rel (!%p16_p2) target bundleno = 6 (0x6), region = 78 }
  0xff   :  { %628 = vsyncpa [#allocation4], 1 }
 0x100   :  { %630 = vsyncpa [#allocation4 + $0x1], 1 }
 0x101   :  { %631 = vsyncpa [#allocation5], 1 }
 0x102   :  { %633 = vsyncpa [#allocation5 + $0x1], 1 }
 0x103   :  { %634 = vsyncpa [#allocation6], 1 }
 0x104   :  { %636 = vsyncpa [#allocation6 + $0x1], 1 }

</bundles_post_ra>
